<compile_context>
chip_gen: v5e
topology: v5e:2x2
jax: 0.10.0
libtpu: 0.0.40
codegen_flags: <defaults>
</compile_context>

<pallas_src>
import functools
import math

import jax
import jax.numpy as jnp
from jax import lax
from jax.experimental import pallas as pl
from jax.experimental.pallas import tpu as pltpu


def _vmem_capacity_bytes():
    try:
        return int(pltpu.get_tpu_info().vmem_capacity_bytes)
    except Exception:
        return 64 * 1024 * 1024  # conservative (v7x-sized) fallback


_VMEM_CAP = _vmem_capacity_bytes()
_VMEM_LIMIT = min(96 * 1024 * 1024, (_VMEM_CAP * 3) // 4)   # 96 MiB on v5e/v6e, 48 MiB on v7x
_BIG_VMEM = _VMEM_CAP > 64 * 1024 * 1024
_TM_PREF = 512 if _BIG_VMEM else 256
_TN_PREF = 512 if _BIG_VMEM else 256
_TK_PREF = 512
_TF_PREF = 512 if _BIG_VMEM else 256


def _tile(dim, pref, align):
    """Largest `align`-multiple divisor of `dim` that is <= pref; else the full extent."""
    if dim <= pref:
        return dim
    t = (pref // align) * align
    while t >= align:
        if dim % t == 0:
            return t
        t -= align
    # TODO(synk): pad ragged dims up to a tile multiple instead of one giant (lane-sparse) block.
    return dim


def _cparams(sem):
    return pltpu.CompilerParams(dimension_semantics=sem, vmem_limit_bytes=_VMEM_LIMIT)


# ----------------------------------------------------------------------------
# Kernel 1: LayerNorm (center + rstd; affine folded into w) fused into a matmul
# ----------------------------------------------------------------------------
def _ln_matmul_kernel(x_ref, w_ref, b_ref, o_ref, xn_ref, *, eps):
    j = pl.program_id(1)

    @pl.when(j == 0)  # normalize each m-tile once, not once per N-tile
    def _():
        x = x_ref[...]                                            # (tm, D) f32
        d = x.shape[-1]
        mean = jnp.mean(x, axis=-1, keepdims=True)
        xc = x - mean
        var = jnp.sum(xc * xc, axis=-1, keepdims=True) * (1.0 / (d - 1))   # unbiased (torch.std)
        xn_ref[...] = (xc * pl.reciprocal(jnp.sqrt(var) + eps)).astype(xn_ref.dtype)

    out = jnp.dot(xn_ref[...], w_ref[...], preferred_element_type=jnp.float32) + b_ref[...]
    o_ref[...] = out.astype(o_ref.dtype)


def fused_ln_matmul(x2d, w, b, *, eps=1e-6, out_dtype=jnp.bfloat16):
    M, D = x2d.shape
    N = w.shape[1]
    tm, tn = _tile(M, _TM_PREF, 8), _tile(N, _TN_PREF, 128)
    return pl.pallas_call(
        functools.partial(_ln_matmul_kernel, eps=eps),
        out_shape=jax.ShapeDtypeStruct((M, N), out_dtype),
        grid=(M // tm, N // tn),
        in_specs=[pl.BlockSpec((tm, D), lambda i, j: (i, 0)),
                  pl.BlockSpec((D, tn), lambda i, j: (0, j)),
                  pl.BlockSpec((1, tn), lambda i, j: (0, j))],
        out_specs=pl.BlockSpec((tm, tn), lambda i, j: (i, j)),
        scratch_shapes=[pltpu.VMEM((tm, D), jnp.bfloat16)],      # cached normalized activations
        compiler_params=_cparams(("parallel", "arbitrary")),
    )(x2d, w, b.reshape(1, N))


# ----------------------------------------------------------------------------
# Kernel 2: tiled matmul with residual add fused into the epilogue
# ----------------------------------------------------------------------------
def _matmul_res_kernel(x_ref, w_ref, b_ref, res_ref, o_ref, acc_ref):
    k = pl.program_id(2)

    @pl.when(k == 0)
    def _():
        acc_ref[...] = jnp.zeros_like(acc_ref)

    acc_ref[...] += jnp.dot(x_ref[...], w_ref[...], preferred_element_type=jnp.float32)

    @pl.when(k == pl.num_programs(2) - 1)
    def _():
        o_ref[...] = (acc_ref[...] + b_ref[...] + res_ref[...]).astype(o_ref.dtype)


def matmul_residual(x2d, w, b, res2d):
    M, K = x2d.shape
    N = w.shape[1]
    tm = _tile(M, _TM_PREF, 8)
    tn = _tile(N, _TN_PREF, 128)
    tk = _tile(K, _TK_PREF, 128)
    return pl.pallas_call(
        _matmul_res_kernel,
        out_shape=jax.ShapeDtypeStruct((M, N), jnp.float32),
        grid=(M // tm, N // tn, K // tk),
        in_specs=[pl.BlockSpec((tm, tk), lambda i, j, k: (i, k)),
                  pl.BlockSpec((tk, tn), lambda i, j, k: (k, j)),
                  pl.BlockSpec((1, tn), lambda i, j, k: (0, j)),
                  pl.BlockSpec((tm, tn), lambda i, j, k: (i, j))],
        out_specs=pl.BlockSpec((tm, tn), lambda i, j, k: (i, j)),
        scratch_shapes=[pltpu.VMEM((tm, tn), jnp.float32)],
        compiler_params=_cparams(("parallel", "parallel", "arbitrary")),
    )(x2d, w, b.reshape(1, N), res2d)


# ----------------------------------------------------------------------------
# Kernel 3: multi-head attention, one grid step per batch, heads packed on lanes
# ----------------------------------------------------------------------------
def _attn_kernel(qkv_ref, mask_ref, o_ref, *, H):
    T, D3 = qkv_ref.shape[1], qkv_ref.shape[2]
    D = D3 // 3
    dk = D // H
    # additive mask bias computed ONCE (hoisted out of the unrolled head loop)
    bias = jnp.where(mask_ref[0] != 0.0, 0.0, -1e9)               # (Mq, Tk) f32
    # TODO(synk): at production T / dk switch to a flash-style grid=(B, head-pack, Tq-tiles)
    # online-softmax kernel with >=128-wide (head-packed) contractions; at demo sizes the full
    # (T, T) score matrix fits comfortably and the static per-head loop is fully unrolled.
    for h in range(H):
        # zero-cost ref views: only (T, dk) is live per head, no full (T, 3D) value load
        qh = qkv_ref[0, :, h * dk:(h + 1) * dk]                   # bf16, 1/sqrt(dk) pre-folded
        kh = qkv_ref[0, :, D + h * dk:D + (h + 1) * dk]
        vh = qkv_ref[0, :, 2 * D + h * dk:2 * D + (h + 1) * dk]
        s = lax.dot_general(qh, kh, (((1,), (1,)), ((), ())),
                            preferred_element_type=jnp.float32) + bias
        s_max = jnp.max(s, axis=-1, keepdims=True)
        p = jnp.exp(s - s_max)
        p = p * pl.reciprocal(jnp.sum(p, axis=-1, keepdims=True))  # exact reciprocal
        # per-head direct store (no concatenate -> bounded live ranges, no lane repack)
        o_ref[0, :, h * dk:(h + 1) * dk] = jnp.dot(
            p.astype(vh.dtype), vh, preferred_element_type=jnp.float32).astype(o_ref.dtype)


def attention(qkv, mask, H):
    B, T, D3 = qkv.shape
    D = D3 // 3
    Mq, Tk = mask.shape[1], mask.shape[2]
    return pl.pallas_call(
        functools.partial(_attn_kernel, H=H),
        out_shape=jax.ShapeDtypeStruct((B, T, D), jnp.bfloat16),
        grid=(B,),
        in_specs=[pl.BlockSpec((1, T, D3), lambda b: (b, 0, 0)),
                  # original (B, Mq, Tk) mask — never broadcast over heads in HBM
                  pl.BlockSpec((1, Mq, Tk), lambda b: (b, 0, 0))],
        out_specs=pl.BlockSpec((1, T, D), lambda b: (b, 0, 0)),
        compiler_params=_cparams(("parallel",)),
    )(qkv, mask.astype(jnp.float32))


# ----------------------------------------------------------------------------
# Kernel 4: fully fused FFN sublayer (LN + W1 + ReLU + W2 + residual); the
#           (tm, d_ff) hidden activation never touches HBM.
# ----------------------------------------------------------------------------
def _ffn_kernel(x_ref, w1_ref, b1_ref, w2_ref, b2_ref, o_ref, xn_ref, acc_ref, *, eps):
    j = pl.program_id(1)                                          # d_ff tile (reduction for W2)

    @pl.when(j == 0)
    def _():
        x = x_ref[...]                                            # (tm, D) f32 residual input
        d = x.shape[-1]
        mean = jnp.mean(x, axis=-1, keepdims=True)
        xc = x - mean
        var = jnp.sum(xc * xc, axis=-1, keepdims=True) * (1.0 / (d - 1))
        xn_ref[...] = (xc * pl.reciprocal(jnp.sqrt(var) + eps)).astype(xn_ref.dtype)
        acc_ref[...] = jnp.zeros_like(acc_ref)

    h = jnp.dot(xn_ref[...], w1_ref[...], preferred_element_type=jnp.float32) + b1_ref[...]
    h = jnp.maximum(h, 0.0).astype(w2_ref.dtype)                  # hidden stays on-chip (bf16)
    acc_ref[...] += jnp.dot(h, w2_ref[...], preferred_element_type=jnp.float32)

    @pl.when(j == pl.num_programs(1) - 1)
    def _():
        o_ref[...] = acc_ref[...] + b2_ref[...] + x_ref[...]      # bias + residual, all f32


def fused_ffn(x2d, w1, b1, w2, b2, *, eps=1e-6):
    M, D = x2d.shape
    FF = w1.shape[1]
    tm = _tile(M, _TM_PREF, 8)
    tf = _tile(FF, _TF_PREF, 128)
    return pl.pallas_call(
        functools.partial(_ffn_kernel, eps=eps),
        out_shape=jax.ShapeDtypeStruct((M, D), jnp.float32),
        grid=(M // tm, FF // tf),
        in_specs=[pl.BlockSpec((tm, D), lambda i, j: (i, 0)),
                  pl.BlockSpec((D, tf), lambda i, j: (0, j)),
                  pl.BlockSpec((1, tf), lambda i, j: (0, j)),
                  pl.BlockSpec((tf, D), lambda i, j: (j, 0)),
                  pl.BlockSpec((1, D), lambda i, j: (0, 0))],
        out_specs=pl.BlockSpec((tm, D), lambda i, j: (i, 0)),
        scratch_shapes=[pltpu.VMEM((tm, D), jnp.bfloat16),        # cached normalized activations
                        pltpu.VMEM((tm, D), jnp.float32)],        # f32 accumulator
        compiler_params=_cparams(("parallel", "arbitrary")),
    )(x2d, w1, b1.reshape(1, FF), w2, b2.reshape(1, D))


# ----------------------------------------------------------------------------
# EncoderLayer forward (glue around the four kernels)
# ----------------------------------------------------------------------------
def encoder_layer(x, mask, p, H):
    """Pre-norm EncoderLayer forward; dropout treated as identity (eval mode)."""
    B, T, D = x.shape
    M = B * T
    x2 = x.reshape(M, D)
    # sublayer 0: x + Wo @ attn(LN(x)); LN affine + 1/sqrt(dk) folded into wqkv (bf16)
    qkv = fused_ln_matmul(x2, p["wqkv"], p["bqkv"])                     # bf16 (M, 3D)
    attn = attention(qkv.reshape(B, T, 3 * D), mask, H)                 # bf16 (B, T, D)
    x2 = matmul_residual(attn.reshape(M, D), p["wo"], p["bo"], x2)      # f32 residual
    # sublayer 1: x + W2 relu(W1 LN(x)); one fused kernel, hidden activation stays in VMEM
    x2 = fused_ffn(x2, p["w1"], p["b1"], p["w2"], p["b2"])
    return x2.reshape(B, T, D)


# ----------------------------------------------------------------------------
# Parameter init (raw module-style, f32) and Pallas-side preparation (folding + bf16)
# ----------------------------------------------------------------------------
def init_params(key, D, H, d_ff):
    def lin(k, din, dout):
        kw, kb = jax.random.split(k)
        w = jax.random.normal(kw, (din, dout), jnp.float32) / math.sqrt(din)
        b = jax.random.normal(kb, (dout,), jnp.float32) * 0.01
        return w, b

    ks = jax.random.split(key, 6)
    wq, bq = lin(ks[0], D, D)
    wk, bk = lin(ks[1], D, D)
    wv, bv = lin(ks[2], D, D)
    wo, bo = lin(ks[3], D, D)
    w1, b1 = lin(ks[4], D, d_ff)
    w2, b2 = lin(ks[5], d_ff, D)
    return dict(
        ln0_g=jnp.ones((D,), jnp.float32), ln0_b=jnp.zeros((D,), jnp.float32),
        ln1_g=jnp.ones((D,), jnp.float32), ln1_b=jnp.zeros((D,), jnp.float32),
        wq=wq, bq=bq, wk=wk, bk=bk, wv=wv, bv=bv,
        wo=wo, bo=bo, w1=w1, b1=b1, w2=w2, b2=b2)


def prepare_params(raw, H):
    """Fold LN affine + attention scale into the weights; cast weights to bf16 for the MXU."""
    D = raw["wq"].shape[0]
    dk = D // H
    scale = jnp.float32(1.0 / math.sqrt(dk))

    def fold_ln(g, b_ln, w, b):
        # (g*xn + b_ln) @ w + b  ==  xn @ (diag(g) w) + (b_ln @ w + b)
        return g[:, None] * w, b_ln @ w + b

    wq, bq = fold_ln(raw["ln0_g"], raw["ln0_b"], raw["wq"], raw["bq"])
    wk, bk = fold_ln(raw["ln0_g"], raw["ln0_b"], raw["wk"], raw["bk"])
    wv, bv = fold_ln(raw["ln0_g"], raw["ln0_b"], raw["wv"], raw["bv"])
    w1, b1 = fold_ln(raw["ln1_g"], raw["ln1_b"], raw["w1"], raw["b1"])
    wq, bq = wq * scale, bq * scale                      # fold 1/sqrt(dk) into the Q projection
    return dict(
        wqkv=jnp.concatenate([wq, wk, wv], axis=1).astype(jnp.bfloat16),
        bqkv=jnp.concatenate([bq, bk, bv], axis=0).astype(jnp.float32),
        wo=raw["wo"].astype(jnp.bfloat16), bo=raw["bo"].astype(jnp.float32),
        w1=w1.astype(jnp.bfloat16), b1=b1.astype(jnp.float32),
        w2=raw["w2"].astype(jnp.bfloat16), b2=raw["b2"].astype(jnp.float32))


# ----------------------------------------------------------------------------
# Pure-JAX reference (same math, full f32) for a correctness sanity check
# ----------------------------------------------------------------------------
_HI = jax.lax.Precision.HIGHEST


def _ref_layernorm(x, g, b, eps=1e-6):
    mean = x.mean(-1, keepdims=True)
    var = jnp.sum((x - mean) ** 2, -1, keepdims=True) / (x.shape[-1] - 1)
    return g * (x - mean) / (jnp.sqrt(var) + eps) + b


def _ref_encoder_layer(x, mask, p, H):
    B, T, D = x.shape
    dk = D // H
    y = _ref_layernorm(x, p["ln0_g"], p["ln0_b"])
    q = jnp.dot(y, p["wq"], precision=_HI) + p["bq"]
    k = jnp.dot(y, p["wk"], precision=_HI) + p["bk"]
    v = jnp.dot(y, p["wv"], precision=_HI) + p["bv"]

    def heads(t):
        return t.reshape(B, T, H, dk).transpose(0, 2, 1, 3)

    q, k, v = heads(q), heads(k), heads(v)
    s = jnp.einsum("bhqd,bhkd->bhqk", q, k, precision=_HI) / math.sqrt(dk)
    s = jnp.where(mask[:, None, :, :] != 0, s, -1e9)
    pa = jax.nn.softmax(s, axis=-1)
    o = jnp.einsum("bhqk,bhkd->bhqd", pa, v, precision=_HI)
    o = o.transpose(0, 2, 1, 3).reshape(B, T, D)
    x = x + jnp.dot(o, p["wo"], precision=_HI) + p["bo"]
    y = _ref_layernorm(x, p["ln1_g"], p["ln1_b"])
    h = jnp.maximum(jnp.dot(y, p["w1"], precision=_HI) + p["b1"], 0.0)
    return x + jnp.dot(h, p["w2"], precision=_HI) + p["b2"]


# ----------------------------------------------------------------------------
if __name__ == "__main__":
    B, T, D, H, d_ff = 2, 8, 32, 4, 64

    key = jax.random.PRNGKey(0)
    kx, kp = jax.random.split(key)
    x = jax.random.normal(kx, (B, T, D), jnp.float32)
    # padding mask (B, 1, T): second sequence has its last 2 positions masked out
    lengths = jnp.array([T, T - 2], jnp.int32)
    mask = (jnp.arange(T)[None, None, :] < lengths[:, None, None]).astype(jnp.float32)

    raw = init_params(kp, D, H, d_ff)
    params = prepare_params(raw, H)

    out = encoder_layer(x, mask, params, H)
    out = jax.block_until_ready(out)

    ref = _ref_encoder_layer(x, mask, raw, H)
    err = float(jnp.max(jnp.abs(out - ref)))

    assert out.shape == (B, T, D)
    assert bool(jnp.all(jnp.isfinite(out)))
    # bf16 matmul operands (f32 accumulation) vs the HIGHEST-precision f32 reference
    assert err < 5e-2, f"max abs err vs reference: {err}"
    print("KERNEL_OK")
</pallas_src>

<mosaic_0001>
module attributes {stable_mosaic.version = 11 : i64} {
  func.func @_ln_matmul_kernel(%arg0: i32, %arg1: i32, %arg2: memref<16x32xf32, #tpu.memory_space<vmem>>, %arg3: memref<32x96xbf16, #tpu.memory_space<vmem>>, %arg4: memref<1x96xf32, #tpu.memory_space<vmem>>, %arg5: memref<16x96xbf16, #tpu.memory_space<vmem>>, %arg6: memref<16x32xbf16, #tpu.memory_space<vmem>>) attributes {dimension_semantics = [#tpu.dimension_semantics<parallel>, #tpu.dimension_semantics<arbitrary>], iteration_bounds = array<i64: 1, 1>, scalar_prefetch = 0 : i64, scratch_operands = 1 : i64, tpu.core_type = #tpu.core_type<tc>, window_params = [{transform_indices = @transform_0, window_bounds = array<i64: 16, 32>}, {transform_indices = @transform_1, window_bounds = array<i64: 32, 96>}, {transform_indices = @transform_2, window_bounds = array<i64: 1, 96>}, {transform_indices = @transform_3, window_bounds = array<i64: 16, 96>}]} {
    %c0_i32 = arith.constant 0 : i32
    %0 = arith.cmpi eq, %arg1, %c0_i32 : i32
    %1 = arith.extui %0 : i1 to i32
    %c0_i32_0 = arith.constant 0 : i32
    %2 = arith.cmpi ne, %1, %c0_i32_0 : i32
    scf.if %2 {
      %c0_8 = arith.constant 0 : index
      %c0_9 = arith.constant 0 : index
      %11 = vector.load %arg2[%c0_8, %c0_9] : memref<16x32xf32, #tpu.memory_space<vmem>>, vector<16x32xf32>
      %cst_10 = arith.constant dense<0.000000e+00> : vector<16xf32>
      %12 = vector.multi_reduction <add>, %11, %cst_10 [1] : vector<16x32xf32> to vector<16xf32>
      %13 = vector.shape_cast %12 : vector<16xf32> to vector<16x1xf32>
      %cst_11 = arith.constant 3.200000e+01 : f32
      %14 = vector.broadcast %cst_11 : f32 to vector<16x1xf32>
      %15 = arith.divf %13, %14 : vector<16x1xf32>
      %16 = vector.broadcast %15 : vector<16x1xf32> to vector<16x32xf32>
      %17 = arith.subf %11, %16 : vector<16x32xf32>
      %18 = arith.mulf %17, %17 : vector<16x32xf32>
      %cst_12 = arith.constant dense<0.000000e+00> : vector<16xf32>
      %19 = vector.multi_reduction <add>, %18, %cst_12 [1] : vector<16x32xf32> to vector<16xf32>
      %20 = vector.shape_cast %19 : vector<16xf32> to vector<16x1xf32>
      %cst_13 = arith.constant 0.0322580636 : f32
      %21 = vector.broadcast %cst_13 : f32 to vector<16x1xf32>
      %22 = arith.mulf %20, %21 : vector<16x1xf32>
      %23 = math.sqrt %22 : vector<16x1xf32>
      %cst_14 = arith.constant 9.99999997E-7 : f32
      %24 = vector.broadcast %cst_14 : f32 to vector<16x1xf32>
      %25 = arith.addf %23, %24 : vector<16x1xf32>
      %26 = tpu.reciprocal %25 : vector<16x1xf32> -> vector<16x1xf32>
      %27 = vector.broadcast %26 : vector<16x1xf32> to vector<16x32xf32>
      %28 = arith.mulf %17, %27 : vector<16x32xf32>
      %29 = arith.truncf %28 : vector<16x32xf32> to vector<16x32xbf16>
      %c0_15 = arith.constant 0 : index
      %c0_16 = arith.constant 0 : index
      %30 = vector.load %arg6[%c0_15, %c0_16] : memref<16x32xbf16, #tpu.memory_space<vmem>>, vector<16x32xbf16>
      tpu.vector_store %arg6[%c0_15, %c0_16], %29 {strides = array<i32>} : memref<16x32xbf16, #tpu.memory_space<vmem>>, vector<16x32xbf16>,
    } else {
    }
    %c0 = arith.constant 0 : index
    %c0_1 = arith.constant 0 : index
    %3 = vector.load %arg6[%c0, %c0_1] : memref<16x32xbf16, #tpu.memory_space<vmem>>, vector<16x32xbf16>
    %c0_2 = arith.constant 0 : index
    %c0_3 = arith.constant 0 : index
    %4 = vector.load %arg3[%c0_2, %c0_3] : memref<32x96xbf16, #tpu.memory_space<vmem>>, vector<32x96xbf16>
    %cst = arith.constant dense<0.000000e+00> : vector<16x96xf32>
    %5 = tpu.matmul %3, %4, %cst {dimension_numbers = #tpu.dot_dimension_numbers<[1], [0], [0], [1], [0, 0, 1, 1], [], []>} : vector<16x32xbf16>, vector<32x96xbf16>, vector<16x96xf32> -> vector<16x96xf32>
    %c0_4 = arith.constant 0 : index
    %c0_5 = arith.constant 0 : index
    %6 = vector.load %arg4[%c0_4, %c0_5] : memref<1x96xf32, #tpu.memory_space<vmem>>, vector<1x96xf32>
    %7 = vector.broadcast %6 : vector<1x96xf32> to vector<16x96xf32>
    %8 = arith.addf %5, %7 : vector<16x96xf32>
    %9 = arith.truncf %8 : vector<16x96xf32> to vector<16x96xbf16>
    %c0_6 = arith.constant 0 : index
    %c0_7 = arith.constant 0 : index
    %10 = vector.load %arg5[%c0_6, %c0_7] : memref<16x96xbf16, #tpu.memory_space<vmem>>, vector<16x96xbf16>
    tpu.vector_store %arg5[%c0_6, %c0_7], %9 {strides = array<i32>} : memref<16x96xbf16, #tpu.memory_space<vmem>>, vector<16x96xbf16>,
    return
  }
  func.func @transform_0(%arg0: i32, %arg1: i32) -> (i32, i32) {
    %c0_i32 = arith.constant 0 : i32
    %c0_i32_0 = arith.constant 0 : i32
    return %arg0, %c0_i32 : i32, i32
  }
  func.func @transform_1(%arg0: i32, %arg1: i32) -> (i32, i32) {
    %c0_i32 = arith.constant 0 : i32
    %c0_i32_0 = arith.constant 0 : i32
    return %c0_i32, %arg1 : i32, i32
  }
  func.func @transform_2(%arg0: i32, %arg1: i32) -> (i32, i32) {
    %c0_i32 = arith.constant 0 : i32
    %c0_i32_0 = arith.constant 0 : i32
    return %c0_i32, %arg1 : i32, i32
  }
  func.func @transform_3(%arg0: i32, %arg1: i32) -> (i32, i32) {
    %c0_i32 = arith.constant 0 : i32
    return %arg0, %arg1 : i32, i32
  }
}

</mosaic_0001>

<bundles_post_ra>
// kernel: tpu_custom_call.1
= control target key start
LH: loop header
LB: loop body
LE: loop exit
PB: predicated region body
PF: predicated region fallthrough
CT: control target
= control target key end

     0   :  { %8 = vsyncpa [#allocation4], 0  ;;  %s389_s0 = inlined_call_operand.hbm [shape: f32[16,32], index: 0, kind: input, shape index: {}]   ;;  %s390_s1 = inlined_call_operand.hbm [shape: bf16[32,96], index: 1, kind: input, shape index: {}]   ;;  %s391_s2 = inlined_call_operand.vmem [shape: f32[1,96], index: 2, kind: input, shape index: {}]   ;;  %s392_s3 = inlined_call_operand.hbm [shape: bf16[16,96], index: 3, kind: output, shape index: {}]  }
   0x1   :  { %9 = vsyncpa [#allocation7], 0 }
   0x2   :  { %10 = vsyncpa [#allocation5], 0  ;;  %s15_s14 = sshll.u32 %s389_s0, 4  ;;  %s326_s15 = smov [#allocation3]   ;;  %s16_s14 = int_to_ptr.hbm [resolvable:$true] %s15_s14 }
   0x3   :  { %s17_s16 = sshll.u32 %s326_s15, 4  ;;  %s28_s19 = sshll.u32 %s390_s1, 4  ;;  %s18_s16 = int_to_ptr.vmem [resolvable:$true] %s17_s16  ;;  %s29_s19 = int_to_ptr.hbm [resolvable:$true] %s28_s19 }
   0x4   :  { %s327_s20 = smov 128   ;;  %s328_s21 = smov 8  }
   0x5   :  { %23 = dma.hbm_to_vmem [thread:$0]  %s16_s14, 256, %s18_s16, [#allocation4], %s327_s20, %s327_s20, %s328_s21  }
   0x6   :  { %s329_s22 = smov [#allocation6]   ;;  %s330_s24 = smov 64  }
   0x7   :  { %s30_s23 = sshll.u32 %s329_s22, 4  ;;  %s331_s25 = smov 4   ;;  %s31_s23 = int_to_ptr.vmem [resolvable:$true] %s30_s23 }
   0x8   :  { %36 = dma.hbm_to_vmem [thread:$0]  %s29_s19, 256, %s31_s23, [#allocation7], %s330_s24, %s330_s24, %s331_s25  }
   0x9   :  { %320 = dma.done.wait [#allocation4], 256  }
   0xa   :  { %321 = vsyncadd [#allocation4], 4294967040 }
   0xb   :  { %322 = dma.done.wait [#allocation7], 256  }
   0xc   :  { %323 = vsyncadd [#allocation7], 4294967040  ;;  %vm54_vm0 = vcmask 261120   ;;  %v52_v0 = vld [vmem:[#allocation3] sm:$0xff]  ;;  %v53_v2 = vld [vmem:[#allocation3 + $0x8] sm:$0xff]  ;;  %v332_v4 = vmov 32.0  }
   0xd   :  { %v55_v1 = vsel %vm54_vm0, %v52_v0, 0.0  ;;  %v58_v3 = vsel %vm54_vm0, %v53_v2, 0.0  ;;  %238 = vrcp.f32 %v332_v4  ;;  %v228_v33 = vld [vmem:[#allocation6 + $0x8] sm:$0xff]  ;;  %v227_v37 = vld [vmem:[#allocation6] sm:$0xff]  ;;  %vm140_vm10 = vcmask 257024   ;;  %s333_s26 = smov [#allocation8]  }
   0xe   :  { %56 = vadd.xlane.f32.xlu0 %v55_v1  ;;  %180 = vmatpush.bf16.msra.mxu0 %v228_v33  ;;  %vm190_vm15 = vcmask 781312   ;;  %s197_s27 = sshll.u32 %s333_s26, 4  ;;  %s199_s30 = sshll.u32 %s392_s3, 4  ;;  %s198_s27 = int_to_ptr.vmem [resolvable:$true] %s197_s27  ;;  %s200_s30 = int_to_ptr.hbm [resolvable:$true] %s199_s30 }
  0x12   :  { %181 = vmatpush.bf16.msra.mxu0 %v227_v37 }
  0x13   :  { %v239_v5 = vpop.eup %238 }
  0x14   :  { %v62_v6 = vmul.f32 32.0, %v239_v5  ;;  %vm66_vm1 = vweird.f32 %v239_v5 }
  0x16   :  { %59 = vadd.xlane.f32.xlu0 %v58_v3  ;;  %v63_v7 = vsub.f32 1.0, %v62_v6 }
  0x18   :  { %v64_v8 = vmul.f32 %v239_v5, %v63_v7 }
  0x1a   :  { %v65_v9 = vadd.f32 %v239_v5, %v64_v8 }
  0x1c   :  { %v67_v10 = vsel %vm66_vm1, %v239_v5, %v65_v9 }
  0x81   :  { %v57_v11 = vpop.xlane.xlu0 %56 }
  0x82   :  { %v68_v12 = vmul.f32 %v67_v10, %v57_v11 }
  0x84   :  { %v365_v13 = vsub.f32 %v52_v0, %v68_v12 }
  0x86   :  { %v72_v14 = vmul.f32 %v365_v13, %v365_v13 }
  0x88   :  { %v74_v15 = vsel %vm54_vm0, %v72_v14, 0.0 }
  0x89   :  { %75 = vadd.xlane.f32.xlu1 %v74_v15  ;;  %v60_v16 = vpop.xlane.xlu0 %59 }
  0x8a   :  { %v69_v17 = vmul.f32 %v67_v10, %v60_v16  ;;  %v237_v10 = vld [vmem:[%s391_s2] ss:$0 sm:$0xff] }
  0x8c   :  { %v370_v18 = vsub.f32 %v53_v2, %v69_v17 }
  0x8e   :  { %v73_v19 = vmul.f32 %v370_v18, %v370_v18 }
  0x90   :  { %v77_v20 = vsel %vm54_vm0, %v73_v19, 0.0 }
  0x91   :  { %78 = vadd.xlane.f32.xlu1 %v77_v20 }
  0xfc   :  { %v76_v21 = vpop.xlane.xlu1 %75 }
  0xfd   :  { %v80_v22 = vmul.f32 0.032258064, %v76_v21 }
  0xff   :  { %240 = vrsqrt.f32 %v80_v22  ;;  %vm89_vm2 = vcmp.eq.f32.partialorder %v80_v22, inf  ;;  %v92_v36 = vand.u32 2147483648, %v80_v22  ;;  %vm91_vm3 = vcmp.eq.f32.partialorder %v80_v22, 0.0 }
 0x104   :  { %v79_v23 = vpop.xlane.xlu1 %78 }
 0x105   :  { %v241_v24 = vpop.eup %240  ;;  %v81_v25 = vmul.f32 0.032258064, %v79_v23 }
 0x106   :  { %v83_v26 = vmul.f32 %v241_v24, %v80_v22 }
 0x107   :  { %242 = vrsqrt.f32 %v81_v25  ;;  %vm101_vm4 = vcmp.eq.f32.partialorder %v81_v25, inf  ;;  %v104_v45 = vand.u32 2147483648, %v81_v25  ;;  %vm103_vm5 = vcmp.eq.f32.partialorder %v81_v25, 0.0 }
 0x108   :  { %v84_v27 = vmul.f32 %v241_v24, %v83_v26 }
 0x10a   :  { %v85_v28 = vmul.f32 0.5, %v84_v27 }
 0x10c   :  { %v86_v29 = vsub.f32 1.5, %v85_v28 }
 0x10d   :  { %v243_v30 = vpop.eup %242 }
 0x10e   :  { %v87_v31 = vmul.f32 %v241_v24, %v86_v29  ;;  %v95_v32 = vmul.f32 %v243_v30, %v81_v25 }
 0x110   :  { %v88_v34 = vmul.f32 %v87_v31, %v80_v22  ;;  %v96_v35 = vmul.f32 %v243_v30, %v95_v32 }
 0x112   :  { %v90_v38 = vsel %vm89_vm2, %v80_v22, %v88_v34  ;;  %v97_v39 = vmul.f32 0.5, %v96_v35 }
 0x113   :  { %v93_v40 = vsel %vm91_vm3, %v92_v36, %v90_v38 }
 0x114   :  { %v106_v41 = vadd.f32 1e-06, %v93_v40  ;;  %v98_v42 = vsub.f32 1.5, %v97_v39 }
 0x116   :  { %244 = vrcp.f32 %v106_v41  ;;  %v99_v43 = vmul.f32 %v243_v30, %v98_v42  ;;  %v119_v52 = vand.u32 2147483648, %v106_v41  ;;  %v117_v54 = vand.u32 2147483647, %v106_v41 }
 0x117   :  { %vm113_vm7 = vweird.f32 %v106_v41 }
 0x118   :  { %v100_v44 = vmul.f32 %v99_v43, %v81_v25  ;;  %v120_v56 = vor.u32 1.1754944e-38, %v119_v52  ;;  %vm118_vm9 = vcmp.eq.f32.partialorder %v117_v54, 8.507059e+37 }
 0x11a   :  { %v102_v46 = vsel %vm101_vm4, %v81_v25, %v100_v44 }
 0x11b   :  { %v105_v48 = vsel %vm103_vm5, %v104_v45, %v102_v46 }
 0x11c   :  { %v245_v47 = vpop.eup %244  ;;  %v107_v50 = vadd.f32 1e-06, %v105_v48 }
 0x11d   :  { %v109_v49 = vmul.f32 %v245_v47, %v106_v41  ;;  %vm114_vm6 = vweird.f32 %v245_v47 }
 0x11e   :  { %246 = vrcp.f32 %v107_v50  ;;  %vm115_vm8 = vmor %vm113_vm7, %vm114_vm6  ;;  %v133_v63 = vand.u32 2147483648, %v107_v50  ;;  %v131_v2 = vand.u32 2147483647, %v107_v50  ;;  %vm127_vm12 = vweird.f32 %v107_v50 }
 0x11f   :  { %v110_v51 = vsub.f32 1.0, %v109_v49 }
 0x120   :  { %v134_v4 = vor.u32 1.1754944e-38, %v133_v63  ;;  %vm132_vm14 = vcmp.eq.f32.partialorder %v131_v2, 8.507059e+37 }
 0x121   :  { %v111_v53 = vmul.f32 %v245_v47, %v110_v51 }
 0x123   :  { %v112_v55 = vadd.f32 %v245_v47, %v111_v53 }
 0x124   :  { %v247_v57 = vpop.eup %246 }
 0x125   :  { %v116_v58 = vsel %vm115_vm8, %v245_v47, %v112_v55  ;;  %v123_v60 = vmul.f32 %v247_v57, %v107_v50  ;;  %vm128_vm11 = vweird.f32 %v247_v57 }
 0x126   :  { %v121_v59 = vsel %vm118_vm9, %v120_v56, %v116_v58  ;;  %vm129_vm13 = vmor %vm127_vm12, %vm128_vm11 }
 0x127   :  { %v136_v61 = vmul.f32 %v121_v59, %v365_v13  ;;  %v124_v62 = vsub.f32 1.0, %v123_v60 }
 0x129   :  { %v138_v0 = vpack.c.bf16 %v136_v61, %v136_v61  ;;  %v125_v1 = vmul.f32 %v247_v57, %v124_v62 }
 0x12b   :  { %141 = vst.msk [vmem:[#allocation2] sm:$0xf] %vm140_vm10, %v138_v0  ;;  %v126_v3 = vadd.f32 %v247_v57, %v125_v1 }
 0x12d   :  { %v130_v5 = vsel %vm129_vm13, %v247_v57, %v126_v3 }
 0x12e   :  { %v135_v6 = vsel %vm132_vm14, %v134_v4, %v130_v5 }
 0x12f   :  { %v137_v7 = vmul.f32 %v135_v6, %v370_v18 }
 0x131   :  { %v139_v8 = vpack.c.bf16 %v137_v7, %v137_v7 }
 0x133   :  { %142 = vst.msk [vmem:[#allocation2 + $0x4] sm:$0xf] %vm140_vm10, %v139_v8 }
 0x13a   :  { %v226_v9 = vld [vmem:[#allocation2] sm:$0xff] }
 0x13b   :  { %225 = vmatmul.msk.bf16.vlgmr.msra.gmra.mxu0 %vm54_vm0, %v226_v9 }
 0x1b8   :  { %v183_v11 = vpop.f32.mrf.mxu0 }
 0x1b9   :  { %v184_v12 = vadd.f32 %v237_v10, %v183_v11 }
 0x1bb   :  { %v188_v13 = vpack.c.bf16 %v184_v12, %v184_v12 }
 0x1bd   :  { %191 = vst.msk [vmem:[#allocation8] sm:$0xf] %vm190_vm15, %v188_v13 }
 0x1c0   :  { %v185_v14 = vpop.f32.mrf.mxu0 }
 0x1c1   :  { %v186_v15 = vadd.f32 %v237_v10, %v185_v14 }
 0x1c3   :  { %v189_v16 = vpack.c.bf16 %v186_v15, %v186_v15 }
 0x1c5   :  { %192 = vst.msk [vmem:[#allocation8 + $0x4] sm:$0xf] %vm190_vm15, %v189_v16 }
 0x1c6   :  { %205 = dma.vmem_to_hbm [thread:$0]  %s198_s27, 128, %s200_s30, [#allocation5], %s330_s24, %s330_s24, %s331_s25  }
 0x1c7   :  { %324 = dma.done.wait [#allocation5], 128  }
 0x1c8   :  { %325 = vsyncadd [#allocation5], 4294967168 }
 0x1c9   :  { %210 = vsyncpa [#allocation4], 1 }
 0x1ca   :  { %211 = vsyncpa [#allocation7], 1 }
 0x1cb   :  { %212 = vsyncpa [#allocation5], 1 }

</bundles_post_ra>
